<compile_context>
chip_gen: v7x
topology: tpu7x:2x2x1
jax: 0.10.0
libtpu: 0.0.40
codegen_flags: <defaults>
</compile_context>

<pallas_src>
import functools

import jax
import jax.numpy as jnp
from jax.experimental import pallas as pl
from jax.experimental.pallas import tpu as pltpu


def _round_up(a, b):
    return (a + b - 1) // b * b


# ---------------------------------------------------------------------------
# Pallas kernel: one block of `tn` tokens per grid step.
# ---------------------------------------------------------------------------
def _gcn_kernel(x_ref, w_ref, tab_ref, lbl_ref, mask_ref, out_ref, *, upad):
    tn = x_ref.shape[0]
    two_lpad = tab_ref.shape[0]
    lpad = two_lpad // 2
    gate_off = 3 * upad

    x = x_ref[...]                                            # (tn, K)

    # Fused, lane-dense matmul -> [h_in | h_out | h_loop | gates] at
    # 128-aligned lane offsets.
    r = jnp.dot(x, w_ref[...], preferred_element_type=jnp.float32)

    # Per-token label biases gathered from the small VMEM-resident combined
    # table with a single one-hot matmul (no dynamic gather, no (N, U) bias
    # streams from HBM).  Rows [0, lpad) of the table are indexed by label_in,
    # rows [lpad, 2*lpad) by label_out; their output columns are disjoint.
    li = lbl_ref[:, 0:1]                                      # (tn, 1) int32
    lo = lbl_ref[:, 1:2] + lpad
    lane = jax.lax.broadcasted_iota(jnp.int32, (tn, two_lpad), 1)
    oh = jnp.logical_or(lane == li, lane == lo).astype(jnp.float32)
    r = r + jnp.dot(oh, tab_ref[...], preferred_element_type=jnp.float32)

    h_in = r[:, 0:upad]
    h_out = r[:, upad:2 * upad]
    h_loop = r[:, 2 * upad:3 * upad]
    g = r[:, gate_off:gate_off + 3]                           # (tn, 3) gates

    m = mask_ref[...]                                         # (tn, 3)
    # Matches torch: potentials * mask_soft * (sigmoid(gate) * mask_soft),
    # i.e. the mask is applied twice.
    w = jax.nn.sigmoid(g) * (m * m)                           # (tn, 3)

    acc = (w[:, 0:1] * h_in + w[:, 1:2] * h_out + w[:, 2:3] * h_loop)
    out_ref[...] = jnp.maximum(acc, 0.0).astype(out_ref.dtype)


def syntactic_gcn_pallas(x, w_packed, tab, labels, mask, *,
                         upad, tn, vmem_limit_bytes=32 * 1024 * 1024):
    """x: (N, K) tokens (N multiple of tn); returns (N, upad) lane-dense."""
    n, k = x.shape
    wc = w_packed.shape[1]
    two_lpad = tab.shape[0]
    assert n % tn == 0 and tn % 8 == 0

    tok = lambda shape: pl.BlockSpec(shape, lambda i: (i, 0))
    rep = lambda shape: pl.BlockSpec(shape, lambda i: (0, 0))

    return pl.pallas_call(
        functools.partial(_gcn_kernel, upad=upad),
        out_shape=jax.ShapeDtypeStruct((n, upad), jnp.float32),
        grid_spec=pltpu.PrefetchScalarGridSpec(
            num_scalar_prefetch=0,
            grid=(n // tn,),
            in_specs=[
                tok((tn, k)),         # x
                rep((k, wc)),         # fused lane-dense weights (VMEM-resident)
                rep((two_lpad, wc)),  # combined label-bias table
                tok((tn, 2)),         # int32 (label_in, label_out) per token
                tok((tn, 3)),         # mask_soft per token
            ],
            out_specs=tok((tn, upad)),
        ),
        compiler_params=pltpu.CompilerParams(
            dimension_semantics=("parallel",),
            vmem_limit_bytes=vmem_limit_bytes),
    )(x, w_packed, tab, labels, mask)


# ---------------------------------------------------------------------------
# Module-level wrapper reproducing SyntacticGCN.forward (in_arcs & out_arcs).
# ---------------------------------------------------------------------------
def syntactic_gcn_forward(params, encoder_outputs,
                          label_tensor_in, label_tensor_out,
                          mask_in, mask_out, mask_loop,
                          batch_first=False, tn=256):
    if not batch_first:
        # (S, B, K) -> (B, S, K)
        encoder_outputs = jnp.transpose(encoder_outputs, (1, 0, 2))
    B, S, K = encoder_outputs.shape
    N = B * S
    U = params["V_in"].shape[1]
    L = params["b_in"].shape[0]
    upad = _round_up(U, 128)
    lpad = _round_up(max(L, 8), 8)
    gate_off = 3 * upad
    wc = gate_off + 128

    x = encoder_outputs.reshape(N, K).astype(jnp.float32)

    # Pack the six weight matrices into one lane-dense (K, 3*Upad+128) matrix.
    w_packed = jnp.zeros((K, wc), jnp.float32)
    w_packed = w_packed.at[:, 0:U].set(params["V_in"])
    w_packed = w_packed.at[:, upad:upad + U].set(params["V_out"])
    w_packed = w_packed.at[:, 2 * upad:2 * upad + U].set(params["W_self_loop"])
    w_packed = w_packed.at[:, gate_off + 0].set(params["V_in_gate"][:, 0])
    w_packed = w_packed.at[:, gate_off + 1].set(params["V_out_gate"][:, 0])
    w_packed = w_packed.at[:, gate_off + 2].set(params["W_self_loop_gate"][:, 0])

    # Combined label-indexed bias table, laid out identically to the matmul
    # result slab.  Rows [0, lpad): biases indexed by label_in.
    #                Rows [lpad, 2*lpad): biases indexed by label_out.
    tab = jnp.zeros((2 * lpad, wc), jnp.float32)
    tab = tab.at[:L, 0:U].set(params["b_in"])
    tab = tab.at[:L, gate_off + 0].set(params["b_in_gate"][:, 0])
    tab = tab.at[lpad:lpad + L, upad:upad + U].set(params["b_out"])
    tab = tab.at[lpad:lpad + L, gate_off + 1].set(params["b_out_gate"][:, 0])

    labels = jnp.stack([label_tensor_in.astype(jnp.int32),
                        label_tensor_out.astype(jnp.int32)], axis=1)   # (N, 2)
    mask = jnp.concatenate([mask_in, mask_out, mask_loop],
                           axis=1).astype(jnp.float32)                 # (N, 3)

    # Ragged N: pad the token axis to a multiple of the tile size.
    tn_eff = max(8, min(_round_up(tn, 8), _round_up(N, 8)))
    n_pad = _round_up(N, tn_eff)
    if n_pad != N:
        pad = n_pad - N
        x = jnp.pad(x, ((0, pad), (0, 0)))
        labels = jnp.pad(labels, ((0, pad), (0, 0)))
        mask = jnp.pad(mask, ((0, pad), (0, 0)))

    out = syntactic_gcn_pallas(x, w_packed, tab, labels, mask,
                               upad=upad, tn=tn_eff)
    return out[:N, :U].reshape(B, S, U)


# ---------------------------------------------------------------------------
# Pure-JAX reference (mirrors the torch code literally) for verification.
# ---------------------------------------------------------------------------
def syntactic_gcn_ref(params, encoder_outputs,
                      label_tensor_in, label_tensor_out,
                      mask_in, mask_out, mask_loop, batch_first=False):
    if not batch_first:
        encoder_outputs = jnp.transpose(encoder_outputs, (1, 0, 2))
    B, S, K = encoder_outputs.shape
    U = params["V_in"].shape[1]
    x = encoder_outputs.reshape(B * S, K)

    in_ = (x @ params["V_in"] + params["b_in"][label_tensor_in]
           ).reshape(B, S, 1, U)
    in_gate = (x @ params["V_in_gate"] + params["b_in_gate"][label_tensor_in]
               ).reshape(B, S, 1)
    out_ = (x @ params["V_out"] + params["b_out"][label_tensor_out]
            ).reshape(B, S, 1, U)
    out_gate = (x @ params["V_out_gate"] + params["b_out_gate"][label_tensor_out]
                ).reshape(B, S, 1)
    same = (x @ params["W_self_loop"]).reshape(B, S, 1, U)
    same_gate = (x @ params["W_self_loop_gate"]).reshape(B, S, 1)

    potentials = jnp.concatenate([in_, out_, same], axis=2)        # (B,S,3,U)
    potentials_gate = jnp.concatenate([in_gate, out_gate, same_gate], axis=2)
    mask_soft = jnp.concatenate([mask_in, mask_out, mask_loop], axis=1)

    potentials_resh = jnp.transpose(potentials, (3, 0, 1, 2)).reshape(U, B * S, 3)
    potentials_r = potentials_gate.reshape(B * S, 3)
    probs_det = jax.nn.sigmoid(potentials_r) * mask_soft
    masked = potentials_resh * mask_soft * probs_det
    summed = jnp.maximum(masked.sum(axis=2), 0.0)                  # (U, B*S)
    return summed.T.reshape(B, S, U)


# ---------------------------------------------------------------------------
def init_params(key, num_inputs, num_units, num_labels):
    ks = jax.random.split(key, 8)
    xav = lambda k, fan_in, fan_out: jax.random.normal(
        k, (fan_in, fan_out), jnp.float32) * jnp.sqrt(2.0 / (fan_in + fan_out))
    return {
        "V_in": xav(ks[0], num_inputs, num_units),
        "b_in": jnp.zeros((num_labels, num_units), jnp.float32),
        "V_in_gate": jax.random.uniform(ks[1], (num_inputs, 1), jnp.float32),
        "b_in_gate": jnp.ones((num_labels, 1), jnp.float32),
        "V_out": xav(ks[2], num_inputs, num_units),
        # torch code leaves b_out uninitialized (inits b_in twice); use a
        # deterministic small init here. (Overwrite from a checkpoint if
        # matching a trained torch model.)
        "b_out": 0.01 * jax.random.normal(ks[3], (num_labels, num_units), jnp.float32),
        "V_out_gate": jax.random.uniform(ks[4], (num_inputs, 1), jnp.float32),
        "b_out_gate": jnp.ones((num_labels, 1), jnp.float32),
        "W_self_loop": xav(ks[5], num_inputs, num_units),
        "W_self_loop_gate": jax.random.uniform(ks[6], (num_inputs, 1), jnp.float32),
    }


if __name__ == "__main__":
    # Small shapes; S=9 makes N=18 so the ragged-N padding path is exercised.
    B, S = 2, 9
    num_inputs, num_units, num_labels = 32, 32, 5
    N = B * S

    key = jax.random.PRNGKey(0)
    kp, kx, kli, klo, km = jax.random.split(key, 5)
    params = init_params(kp, num_inputs, num_units, num_labels)

    # encoder outputs in (seq_len, batch, num_inputs) — batch_first=False
    encoder_outputs = jax.random.normal(kx, (S, B, num_inputs), jnp.float32)
    label_tensor_in = jax.random.randint(kli, (N,), 0, num_labels)
    label_tensor_out = jax.random.randint(klo, (N,), 0, num_labels)
    masks = jax.random.bernoulli(km, 0.8, (3, N, 1)).astype(jnp.float32)
    mask_in, mask_out = masks[0], masks[1]
    mask_loop = jnp.ones((N, 1), jnp.float32)

    out = syntactic_gcn_forward(params, encoder_outputs,
                                label_tensor_in, label_tensor_out,
                                mask_in, mask_out, mask_loop)
    out = jax.block_until_ready(out)

    ref = syntactic_gcn_ref(params, encoder_outputs,
                            label_tensor_in, label_tensor_out,
                            mask_in, mask_out, mask_loop)
    assert out.shape == (B, S, num_units)
    assert jnp.allclose(out, ref, atol=2e-5, rtol=2e-5), "mismatch vs reference"
    print("KERNEL_OK")
</pallas_src>

<mosaic_0001>
module attributes {stable_mosaic.version = 11 : i64} {
  func.func @_gcn_kernel(%arg0: i32, %arg1: memref<24x32xf32, #tpu.memory_space<vmem>>, %arg2: memref<32x512xf32, #tpu.memory_space<vmem>>, %arg3: memref<16x512xf32, #tpu.memory_space<vmem>>, %arg4: memref<24x2xi32, #tpu.memory_space<vmem>>, %arg5: memref<24x3xf32, #tpu.memory_space<vmem>>, %arg6: memref<24x128xf32, #tpu.memory_space<vmem>>) attributes {dimension_semantics = [#tpu.dimension_semantics<parallel>], iteration_bounds = array<i64: 1>, scalar_prefetch = 0 : i64, scratch_operands = 0 : i64, tpu.core_type = #tpu.core_type<tc>, window_params = [{transform_indices = @transform_0, window_bounds = array<i64: 24, 32>}, {pipeline_mode = #tpu.pipeline_mode<synchronous>, transform_indices = @transform_1, window_bounds = array<i64: 32, 512>}, {pipeline_mode = #tpu.pipeline_mode<synchronous>, transform_indices = @transform_2, window_bounds = array<i64: 16, 512>}, {transform_indices = @transform_3, window_bounds = array<i64: 24, 2>}, {transform_indices = @transform_4, window_bounds = array<i64: 24, 3>}, {transform_indices = @transform_5, window_bounds = array<i64: 24, 128>}]} {
    %c0 = arith.constant 0 : index
    %c0_0 = arith.constant 0 : index
    %0 = vector.load %arg1[%c0, %c0_0] : memref<24x32xf32, #tpu.memory_space<vmem>>, vector<24x32xf32>
    %c0_1 = arith.constant 0 : index
    %c0_2 = arith.constant 0 : index
    %1 = vector.load %arg2[%c0_1, %c0_2] : memref<32x512xf32, #tpu.memory_space<vmem>>, vector<32x512xf32>
    %cst = arith.constant dense<0.000000e+00> : vector<24x512xf32>
    %2 = tpu.matmul %0, %1, %cst {dimension_numbers = #tpu.dot_dimension_numbers<[1], [0], [0], [1], [0, 0, 1, 1], [], []>} : vector<24x32xf32>, vector<32x512xf32>, vector<24x512xf32> -> vector<24x512xf32>
    %c0_3 = arith.constant 0 : index
    %c0_4 = arith.constant 0 : index
    %3 = vector.load %arg4[%c0_3, %c0_4] : memref<24x2xi32, #tpu.memory_space<vmem>>, vector<24x1xi32>
    %c0_5 = arith.constant 0 : index
    %c1 = arith.constant 1 : index
    %4 = vector.load %arg4[%c0_5, %c1] : memref<24x2xi32, #tpu.memory_space<vmem>>, vector<24x1xi32>
    %c8_i32 = arith.constant 8 : i32
    %5 = vector.broadcast %c8_i32 : i32 to vector<24x1xi32>
    %6 = arith.addi %4, %5 : vector<24x1xi32>
    %7 = tpu.iota {dimensions = array<i32: 1>} : vector<24x16xi32>
    %8 = vector.broadcast %3 : vector<24x1xi32> to vector<24x16xi32>
    %9 = arith.cmpi eq, %7, %8 : vector<24x16xi32>
    %10 = vector.broadcast %6 : vector<24x1xi32> to vector<24x16xi32>
    %11 = arith.cmpi eq, %7, %10 : vector<24x16xi32>
    %12 = arith.ori %9, %11 : vector<24x16xi1>
    %13 = arith.extui %12 : vector<24x16xi1> to vector<24x16xi32>
    %14 = arith.sitofp %13 : vector<24x16xi32> to vector<24x16xf32>
    %c0_6 = arith.constant 0 : index
    %c0_7 = arith.constant 0 : index
    %15 = vector.load %arg3[%c0_6, %c0_7] : memref<16x512xf32, #tpu.memory_space<vmem>>, vector<16x512xf32>
    %cst_8 = arith.constant dense<0.000000e+00> : vector<24x512xf32>
    %16 = tpu.matmul %14, %15, %cst_8 {dimension_numbers = #tpu.dot_dimension_numbers<[1], [0], [0], [1], [0, 0, 1, 1], [], []>} : vector<24x16xf32>, vector<16x512xf32>, vector<24x512xf32> -> vector<24x512xf32>
    %17 = arith.addf %2, %16 : vector<24x512xf32>
    %18 = vector.extract_strided_slice %17 {offsets = [0, 0], sizes = [24, 128], strides = [1, 1]} : vector<24x512xf32> to vector<24x128xf32>
    %19 = vector.extract_strided_slice %17 {offsets = [0, 128], sizes = [24, 128], strides = [1, 1]} : vector<24x512xf32> to vector<24x128xf32>
    %20 = vector.extract_strided_slice %17 {offsets = [0, 256], sizes = [24, 128], strides = [1, 1]} : vector<24x512xf32> to vector<24x128xf32>
    %21 = vector.extract_strided_slice %17 {offsets = [0, 384], sizes = [24, 3], strides = [1, 1]} : vector<24x512xf32> to vector<24x3xf32>
    %c0_9 = arith.constant 0 : index
    %c0_10 = arith.constant 0 : index
    %22 = vector.load %arg5[%c0_9, %c0_10] : memref<24x3xf32, #tpu.memory_space<vmem>>, vector<24x3xf32>
    %23 = arith.negf %21 : vector<24x3xf32>
    %24 = math.exp %23 : vector<24x3xf32>
    %cst_11 = arith.constant 1.000000e+00 : f32
    %25 = vector.broadcast %cst_11 : f32 to vector<24x3xf32>
    %26 = arith.addf %25, %24 : vector<24x3xf32>
    %27 = arith.divf %25, %26 : vector<24x3xf32>
    %28 = arith.mulf %22, %22 : vector<24x3xf32>
    %29 = arith.mulf %27, %28 : vector<24x3xf32>
    %30 = vector.extract_strided_slice %29 {offsets = [0, 0], sizes = [24, 1], strides = [1, 1]} : vector<24x3xf32> to vector<24x1xf32>
    %31 = vector.broadcast %30 : vector<24x1xf32> to vector<24x128xf32>
    %32 = arith.mulf %31, %18 : vector<24x128xf32>
    %33 = vector.extract_strided_slice %29 {offsets = [0, 1], sizes = [24, 1], strides = [1, 1]} : vector<24x3xf32> to vector<24x1xf32>
    %34 = vector.broadcast %33 : vector<24x1xf32> to vector<24x128xf32>
    %35 = arith.mulf %34, %19 : vector<24x128xf32>
    %36 = arith.addf %32, %35 : vector<24x128xf32>
    %37 = vector.extract_strided_slice %29 {offsets = [0, 2], sizes = [24, 1], strides = [1, 1]} : vector<24x3xf32> to vector<24x1xf32>
    %38 = vector.broadcast %37 : vector<24x1xf32> to vector<24x128xf32>
    %39 = arith.mulf %38, %20 : vector<24x128xf32>
    %40 = arith.addf %36, %39 : vector<24x128xf32>
    %cst_12 = arith.constant 0.000000e+00 : f32
    %41 = vector.broadcast %cst_12 : f32 to vector<24x128xf32>
    %42 = arith.maximumf %40, %41 : vector<24x128xf32>
    %c0_13 = arith.constant 0 : index
    %c0_14 = arith.constant 0 : index
    %43 = vector.load %arg6[%c0_13, %c0_14] : memref<24x128xf32, #tpu.memory_space<vmem>>, vector<24x128xf32>
    tpu.vector_store %arg6[%c0_13, %c0_14], %42 {strides = array<i32>} : memref<24x128xf32, #tpu.memory_space<vmem>>, vector<24x128xf32>,
    return
  }
  func.func @transform_0(%arg0: i32) -> (i32, i32) {
    %c0_i32 = arith.constant 0 : i32
    %c0_i32_0 = arith.constant 0 : i32
    return %arg0, %c0_i32 : i32, i32
  }
  func.func @transform_1(%arg0: i32) -> (i32, i32) {
    %c0_i32 = arith.constant 0 : i32
    %c0_i32_0 = arith.constant 0 : i32
    %c0_i32_1 = arith.constant 0 : i32
    return %c0_i32, %c0_i32_0 : i32, i32
  }
  func.func @transform_2(%arg0: i32) -> (i32, i32) {
    %c0_i32 = arith.constant 0 : i32
    %c0_i32_0 = arith.constant 0 : i32
    %c0_i32_1 = arith.constant 0 : i32
    return %c0_i32, %c0_i32_0 : i32, i32
  }
  func.func @transform_3(%arg0: i32) -> (i32, i32) {
    %c0_i32 = arith.constant 0 : i32
    %c0_i32_0 = arith.constant 0 : i32
    return %arg0, %c0_i32 : i32, i32
  }
  func.func @transform_4(%arg0: i32) -> (i32, i32) {
    %c0_i32 = arith.constant 0 : i32
    %c0_i32_0 = arith.constant 0 : i32
    return %arg0, %c0_i32 : i32, i32
  }
  func.func @transform_5(%arg0: i32) -> (i32, i32) {
    %c0_i32 = arith.constant 0 : i32
    %c0_i32_0 = arith.constant 0 : i32
    return %arg0, %c0_i32 : i32, i32
  }
}

</mosaic_0001>

<bundles_post_ra>
// kernel: tpu_custom_call.1
= control target key start
LH: loop header
LB: loop body
LE: loop exit
PB: predicated region body
PF: predicated region fallthrough
CT: control target
= control target key end

     0   :  { %10 = vsyncpa [#allocation3], 0  ;;  %s886_s0 = inlined_call_operand.vmem [shape: f32[24,32], index: 0, kind: input, shape index: {}]   ;;  %s887_s1 = inlined_call_operand.hbm [shape: f32[32,512], index: 1, kind: input, shape index: {}]   ;;  %s888_s2 = inlined_call_operand.hbm [shape: f32[16,512], index: 2, kind: input, shape index: {}]   ;;  %s889_s3 = inlined_call_operand.vmem [shape: s32[24,2], index: 3, kind: input, shape index: {}]   ;;  %s890_s4 = inlined_call_operand.vmem [shape: f32[24,3], index: 4, kind: input, shape index: {}]   ;;  %s891_s5 = inlined_call_operand.hbm [shape: f32[24,128], index: 5, kind: output, shape index: {}]  }
   0x1   :  { %11 = vsyncpa [#allocation6], 0 }
   0x2   :  { %12 = vsyncpa [#allocation4], 0  ;;  %s736_s18 = smov [#allocation2]   ;;  %s664_s22 = scalar_lea.hbm %s887_s1, 2048 }
   0x3   :  { %s20_s19 = sshll.u32 %s736_s18, 4  ;;  %p665_p0 = scmp.ne.s32.totalorder %s887_s1, %s664_s22  ;;  %s21_s19 = int_to_ptr.vmem [resolvable:$true] %s20_s19 }
   0x4   :  { %p668_p1 = scmp.lt.u32.totalorder %s664_s22, %s887_s1 }
   0x6   :  { %p670_p2 = pnand %p668_p1, %p665_p0 }
   0x8   :  { %673 = shalt.err (!%p670_p2)
}
   0x9   :  { %s674_s27 = scalar_lea.vmem %s21_s19, 2048  ;;  %p679_p4 = scmp.lt.s32.totalorder %s21_s19, %s21_s19 }
   0xa   :  { %p675_p3 = scmp.ne.s32.totalorder %s21_s19, %s674_s27  ;;  %p680_p5 = scmp.lt.s32.totalorder %s674_s27, %s674_s27 }
   0xc   :  { %p681_p6 = por %p680_p5, %p679_p4 }
   0xe   :  { %p682_p7 = pnand %p681_p6, %p675_p3 }
  0x10   :  { %685 = shalt.err (!%p682_p7)
}
  0x11   :  { %s737_s28 = smov 512   ;;  %s738_s29 = smov 32  }
  0x12   :  { %26 = dma.hbm_to_vmem [thread:$0]  %s887_s1, 2048, %s21_s19, [#allocation3], %s737_s28, %s737_s28, %s738_s29  }
  0x13   :  { %s739_s7 = smov [#allocation5]   ;;  %s686_s11 = scalar_lea.hbm %s888_s2, 1024 }
  0x14   :  { %s32_s8 = sshll.u32 %s739_s7, 4  ;;  %p687_p8 = scmp.ne.s32.totalorder %s888_s2, %s686_s11  ;;  %s33_s8 = int_to_ptr.vmem [resolvable:$true] %s32_s8 }
  0x15   :  { %p690_p9 = scmp.lt.u32.totalorder %s686_s11, %s888_s2 }
  0x17   :  { %p692_p10 = pnand %p690_p9, %p687_p8 }
  0x19   :  { %695 = shalt.err (!%p692_p10)
}
  0x1a   :  { %s696_s16 = scalar_lea.vmem %s33_s8, 1024  ;;  %p701_p12 = scmp.lt.s32.totalorder %s33_s8, %s33_s8 }
  0x1b   :  { %p697_p11 = scmp.ne.s32.totalorder %s33_s8, %s696_s16  ;;  %p702_p13 = scmp.lt.s32.totalorder %s696_s16, %s696_s16 }
  0x1d   :  { %p703_p0 = por %p702_p13, %p701_p12 }
  0x1f   :  { %p704_p1 = pnand %p703_p0, %p697_p11 }
  0x21   :  { %707 = shalt.err (!%p704_p1)
}
  0x22   :  { %38 = dma.hbm_to_vmem [thread:$0]  %s888_s2, 1024, %s33_s8, [#allocation6], %s737_s28, %s737_s28, %s738_s29  }
  0x23   :  { %730 = dma.done.wait [#allocation3], 2048  }
  0x24   :  { %731 = vsyncadd [#allocation3], 4294965248 }
  0x25   :  { %732 = dma.done.wait [#allocation6], 1024  }
  0x26   :  { %733 = vsyncadd [#allocation6], 4294966272  ;;  %v740_v0 = vmov 0   ;;  %v69_v1 = vld [vmem:[%s889_s3 + $0x8] sm:$0xff]  ;;  %v68_v2 = vld [vmem:[%s889_s3] sm:$0xff]  ;;  %v741_v15 = vmov 0.0   ;;  %v74_v27 = vlaneseq }
  0x27   :  { %641 = vset.pattern.permute.xlu1 %v740_v0  ;;  %639 = vset.pattern.permute.xlu0 %v740_v0  ;;  %v112_v3 = vld [vmem:[#allocation5 + $0x18] sm:$0xff]  ;;  %v110_v5 = vld [vmem:[#allocation5 + $0x8] sm:$0xff]  ;;  %v72_v6 = vadd.s32 8, %v69_v1  ;;  %v71_v7 = vadd.s32 8, %v68_v2  ;;  %v111_v10 = vld [vmem:[#allocation5 + $0x10] sm:$0xff]  ;;  %v742_v18 = vmov 1  }
  0x28   :  { %80 = vperm.xlu1 %641, %v69_v1   ;;  %77 = vperm.xlu0 %639, %v68_v2   ;;  %v116_v4 = vld [vmem:[#allocation5 + $0x38] sm:$0xff]  ;;  %v114_v9 = vld [vmem:[#allocation5 + $0x28] sm:$0xff]  ;;  %v115_v11 = vld [vmem:[#allocation5 + $0x30] sm:$0xff]  ;;  %v75_v30 = vand.u32 127, %v74_v27  ;;  %vm117_vm3 = vcmask 130048   ;;  %vm293_vm10 = vcmask 261120  }
  0x29   :  { %v596_v8 = vpack.c.bf16 %v116_v4, %v112_v3  ;;  %v70_v12 = vld [vmem:[%s889_s3 + $0x10] sm:$0xff]  ;;  %v592_v13 = vpack.c.bf16 %v114_v9, %v110_v5  ;;  %v598_v14 = vpack.c.bf16 %v115_v11, %v111_v10  ;;  %191 = vmatprep.mubr.f32.mxu0 %v741_v15  ;;  %274 = vmatprep.mubr.f32.mxu1 %v741_v15  ;;  %v109_v16 = vld [vmem:[#allocation5] sm:$0xff]  ;;  %v55_v21 = vld [vmem:[#allocation2 + $0x18] sm:$0xff]  ;;  %v743_v27 = vmov 2  }
  0x2a   :  { %v113_v17 = vld [vmem:[#allocation5 + $0x20] sm:$0xff]  ;;  %v73_v20 = vadd.s32 8, %v70_v12  ;;  %v59_v22 = vld [vmem:[#allocation2 + $0x38] sm:$0xff]  ;;  %v53_v24 = vld [vmem:[#allocation2 + $0x8] sm:$0xff] }
  0x2b   :  { %597 = vmatprep.subr.bf16.mxu1 %v596_v8  ;;  %v594_v19 = vpack.c.bf16 %v113_v17, %v109_v16  ;;  %593 = vmatprep.subr.bf16.mxu0 %v592_v13  ;;  %v608_v23 = vpack.c.bf16 %v59_v22, %v55_v21  ;;  %v57_v25 = vld [vmem:[#allocation2 + $0x28] sm:$0xff]  ;;  %v54_v31 = vld [vmem:[#allocation2 + $0x10] sm:$0xff]  ;;  %v52_v35 = vld [vmem:[#allocation2] sm:$0xff] }
  0x2c   :  { %642 = vset.pattern.permute.xlu1 %v742_v18  ;;  %640 = vset.pattern.permute.xlu0 %v742_v18  ;;  %v600_v26 = vpack.c.bf16 %v57_v25, %v53_v24  ;;  %v58_v32 = vld [vmem:[#allocation2 + $0x30] sm:$0xff]  ;;  %v56_v36 = vld [vmem:[#allocation2 + $0x20] sm:$0xff]  ;;  %v63_v37 = vld [vmem:[#allocation2 + $0x58] sm:$0xff] }
  0x2d   :  { %92 = vperm.xlu1 %642, %v72_v6   ;;  %89 = vperm.xlu0 %640, %v71_v7   ;;  %v67_v38 = vld [vmem:[#allocation2 + $0x78] sm:$0xff]  ;;  %v61_v39 = vld [vmem:[#allocation2 + $0x48] sm:$0xff]  ;;  %v610_v41 = vpack.c.bf16 %v58_v32, %v54_v31  ;;  %v602_v42 = vpack.c.bf16 %v56_v36, %v52_v35  ;;  %v62_v43 = vld [vmem:[#allocation2 + $0x50] sm:$0xff] }
  0x2e   :  { %599 = vmatpush1.bf16.msra.mxu1 %v598_v14  ;;  %595 = vmatpush1.bf16.msra.mxu0 %v594_v19  ;;  %v65_v40 = vld [vmem:[#allocation2 + $0x68] sm:$0xff]  ;;  %v66_v44 = vld [vmem:[#allocation2 + $0x70] sm:$0xff]  ;;  %v612_v47 = vpack.c.bf16 %v67_v38, %v63_v37  ;;  %v60_v49 = vld [vmem:[#allocation2 + $0x40] sm:$0xff] }
  0x2f   :  { %609 = vmatprep.subr.bf16.mxu1 %v608_v23  ;;  %601 = vmatprep.subr.bf16.mxu0 %v600_v26  ;;  %v604_v48 = vpack.c.bf16 %v65_v40, %v61_v39  ;;  %v64_v50 = vld [vmem:[#allocation2 + $0x60] sm:$0xff]  ;;  %v614_v52 = vpack.c.bf16 %v66_v44, %v62_v43  ;;  %v50_v57 = vld [vmem:[%s886_s0 + $0x8] sm:$0xff]  ;;  %v51_v58 = vld [vmem:[%s886_s0 + $0x10] sm:$0xff] }
  0x30   :  { %v606_v53 = vpack.c.bf16 %v64_v50, %v60_v49  ;;  %v49_v56 = vld [vmem:[%s886_s0] sm:$0xff]  ;;  %v470_v19 = vld [vmem:[%s890_s4 + $0x8] sm:$0xff]  ;;  %v471_v26 = vld [vmem:[%s890_s4 + $0x10] sm:$0xff] }
  0x31   :  { %643 = vset.pattern.permute.xlu1 %v740_v0  ;;  %95 = vperm.xlu0 %640, %v73_v20   ;;  %v491_v23 = vmul.f32 %v470_v19, %v470_v19 }
  0x32   :  { %83 = vperm.xlu1 %643, %v70_v12  }
  0x35   :  { %646 = vset.pattern.permute.xlu0 %v740_v0 }
  0xa7   :  { %v78_v28 = vpop.permute.xlu0 %77  ;;  %v81_v29 = vpop.permute.xlu1 %80 }
  0xa8   :  { %vm85_vm1 = vcmp.eq.s32.totalorder %v75_v30, %v78_v28  ;;  %vm86_vm5 = vcmp.eq.s32.totalorder %v75_v30, %v81_v29  ;;  %v492_v28 = vmul.f32 %v471_v26, %v471_v26 }
  0xac   :  { %v93_v33 = vpop.permute.xlu1 %92  ;;  %v90_v34 = vpop.permute.xlu0 %89 }
  0xad   :  { %vm97_vm0 = vcmp.eq.s32.totalorder %v75_v30, %v90_v34  ;;  %vm98_vm2 = vcmp.eq.s32.totalorder %v75_v30, %v93_v33 }
  0xae   :  { %vm100_vm4 = vmor %vm85_vm1, %vm97_vm0 }
  0xaf   :  { %v574_v45 = vsel %vm100_vm4, 1.0, %v741_v15  ;;  %vm101_vm6 = vmor %vm86_vm5, %vm98_vm2 }
  0xb0   :  { %v96_v46 = vpop.permute.xlu0 %95  ;;  %577 = vmatmul.mubr.msk.f32.vlgmr.msra.gmra.mrb[0].mxu0 %vm117_vm3, %v574_v45  ;;  %580 = vmatmul.mubr.msk.f32.vlgmr.msra.gmra.mrb[0].mxu1 %vm117_vm3, %v574_v45  ;;  %v575_v54 = vsel %vm101_vm6, 1.0, %v741_v15 }
  0xb1   :  { %v84_v51 = vpop.permute.xlu1 %83  ;;  %vm99_vm7 = vcmp.eq.s32.totalorder %v75_v30, %v96_v46  ;;  %611 = vmatpush1.bf16.msra.mxu1 %v610_v41  ;;  %197 = vmatprep.mubr.f32.mxu0 %v741_v15 }
  0xb2   :  { %vm87_vm8 = vcmp.eq.s32.totalorder %v75_v30, %v84_v51  ;;  %280 = vmatprep.mubr.f32.mxu1 %v741_v15  ;;  %603 = vmatpush1.bf16.msra.mxu0 %v602_v42 }
  0xb3   :  { %613 = vmatprep.subr.bf16.mxu1 %v612_v47  ;;  %605 = vmatprep.subr.bf16.mxu0 %v604_v48  ;;  %vm102_vm9 = vmor %vm87_vm8, %vm99_vm7 }
  0xb4   :  { %578 = vmatmul.mubr.msk.f32.gmra.mrb[2].mxu0 %vm117_vm3, %v575_v54  ;;  %581 = vmatmul.mubr.msk.f32.gmra.mrb[2].mxu1 %vm117_vm3, %v575_v54  ;;  %v576_v55 = vsel %vm102_vm9, 1.0, %v741_v15 }
  0xb5   :  { %615 = vmatpush1.bf16.msra.mxu1 %v614_v52  ;;  %203 = vmatprep.mubr.f32.mxu0 %v741_v15 }
  0xb6   :  { %286 = vmatprep.mubr.f32.mxu1 %v741_v15  ;;  %607 = vmatpush1.bf16.msra.mxu0 %v606_v53 }
  0xb8   :  { %579 = vmatmul.mubr.msk.f32.gmra.mrb[4].mxu0 %vm117_vm3, %v576_v55  ;;  %582 = vmatmul.mubr.msk.f32.gmra.mrb[4].mxu1 %vm117_vm3, %v576_v55 }
  0xb9   :  { %367 = vmatprep.mubr.f32.mxu0 %v741_v15  ;;  %450 = vmatprep.mubr.f32.mxu1 %v741_v15 }
  0xbc   :  { %583 = vmatmul.mubr.msk.f32.vlgmr.msra.gmra.mrb[0].mxu0 %vm293_vm10, %v49_v56  ;;  %586 = vmatmul.mubr.msk.f32.vlgmr.msra.gmra.mrb[0].mxu1 %vm293_vm10, %v49_v56 }
  0xbd   :  { %373 = vmatprep.mubr.f32.mxu0 %v741_v15  ;;  %456 = vmatprep.mubr.f32.mxu1 %v741_v15 }
  0xc0   :  { %584 = vmatmul.mubr.msk.f32.gmra.mrb[2].mxu0 %vm293_vm10, %v50_v57  ;;  %587 = vmatmul.mubr.msk.f32.gmra.mrb[2].mxu1 %vm293_vm10, %v50_v57 }
  0xc1   :  { %379 = vmatprep.mubr.f32.mxu0 %v741_v15  ;;  %462 = vmatprep.mubr.f32.mxu1 %v741_v15  ;;  %v469_v15 = vld [vmem:[%s890_s4] sm:$0xff]  ;;  %s744_s4 = smov [#allocation7]  }
  0xc2   :  { %v490_v17 = vmul.f32 %v469_v15, %v469_v15  ;;  %s561_s8 = sshll.u32 %s744_s4, 4  ;;  %s562_s8 = int_to_ptr.vmem [resolvable:$true] %s561_s8 }
  0xc3   :  { %s708_s9 = scalar_lea.vmem %s562_s8, 384  ;;  %p713_p3 = scmp.lt.s32.totalorder %s562_s8, %s562_s8 }
  0xc4   :  { %585 = vmatmul.mubr.msk.f32.gmra.mrb[4].mxu0 %vm293_vm10, %v51_v58  ;;  %588 = vmatmul.mubr.msk.f32.gmra.mrb[4].mxu1 %vm293_vm10, %v51_v58  ;;  %p709_p2 = scmp.ne.s32.totalorder %s562_s8, %s708_s9  ;;  %p714_p4 = scmp.lt.s32.totalorder %s708_s9, %s708_s9 }
  0xc6   :  { %p715_p5 = por %p714_p4, %p713_p3 }
  0xc8   :  { %p716_p6 = pnand %p715_p5, %p709_p2 }
 0x18f   :  { %v369_v59 = vpop.f32.mrb[0].mxu0  ;;  %v846_v60 = vpop.f32.mrb[0].mxu1 }
 0x190   :  { %v371_v61 = vpop.f32.mrb[1].mxu0  ;;  %v454_v62 = vpop.f32.mrb[1].mxu1 }
 0x191   :  { %v589_v63 = vmul.f32 -1.442695, %v454_v62 }
 0x193   :  { %652 = vpow2.f32 %v589_v63  ;;  %v375_v1 = vpop.f32.mrb[2].mxu0  ;;  %v848_v2 = vpop.f32.mrb[2].mxu1 }
 0x194   :  { %v377_v3 = vpop.f32.mrb[3].mxu0  ;;  %v460_v4 = vpop.f32.mrb[3].mxu1 }
 0x195   :  { %v590_v5 = vmul.f32 -1.442695, %v460_v4 }
 0x197   :  { %654 = vpow2.f32 %v590_v5  ;;  %v850_v6 = vpop.f32.mrb[4].mxu0  ;;  %v852_v7 = vpop.f32.mrb[4].mxu1 }
 0x198   :  { %v854_v8 = vpop.f32.mrb[5].mxu0  ;;  %v466_v9 = vpop.f32.mrb[5].mxu1 }
 0x199   :  { %v591_v10 = vmul.f32 -1.442695, %v466_v9 }
 0x19b   :  { %656 = vpow2.f32 %v591_v10 }
 0x19d   :  { %v653_v11 = vpop.eup %652 }
 0x19e   :  { %v481_v12 = vadd.f32 1.0, %v653_v11 }
 0x1a0   :  { %658 = vrcp.f32 %v481_v12 }
 0x1a1   :  { %v655_v13 = vpop.eup %654 }
 0x1a2   :  { %v482_v14 = vadd.f32 1.0, %v655_v13 }
 0x1a4   :  { %660 = vrcp.f32 %v482_v14 }
 0x1a5   :  { %v657_v16 = vpop.eup %656 }
 0x1a6   :  { %v483_v20 = vadd.f32 1.0, %v657_v16 }
 0x1a8   :  { %662 = vrcp.f32 %v483_v20 }
 0x1aa   :  { %v659_v21 = vpop.eup %658 }
 0x1ab   :  { %v493_v22 = vmul.f32 %v659_v21, %v490_v17 }
 0x1ad   :  { %498 = vperm.xlu1 %643, %v493_v22  }
 0x1ae   :  { %v661_v24 = vpop.eup %660 }
 0x1af   :  { %v494_v25 = vmul.f32 %v661_v24, %v491_v23 }
 0x1b1   :  { %644 = vset.pattern.permute.xlu1 %v742_v18  ;;  %503 = vperm.xlu0 %646, %v494_v25  }
 0x1b2   :  { %515 = vperm.xlu1 %644, %v493_v22   ;;  %v663_v29 = vpop.eup %662 }
 0x1b3   :  { %v495_v30 = vmul.f32 %v663_v29, %v492_v28 }
 0x1b5   :  { %647 = vset.pattern.permute.xlu0 %v742_v18 }
 0x1b6   :  { %645 = vset.pattern.permute.xlu1 %v743_v27  ;;  %519 = vperm.xlu0 %647, %v494_v25  }
 0x1b7   :  { %533 = vperm.xlu1 %645, %v493_v22  }
 0x1ba   :  { %650 = vset.pattern.permute.xlu0 %v743_v27 }
 0x1bb   :  { %648 = vset.pattern.permute.xlu1 %v740_v0  ;;  %537 = vperm.xlu0 %650, %v494_v25  }
 0x1bc   :  { %508 = vperm.xlu1 %648, %v495_v30  }
 0x1c0   :  { %649 = vset.pattern.permute.xlu1 %v742_v18 }
 0x1c1   :  { %523 = vperm.xlu1 %649, %v495_v30  }
 0x1c5   :  { %651 = vset.pattern.permute.xlu1 %v743_v27 }
 0x1c6   :  { %541 = vperm.xlu1 %651, %v495_v30  }
 0x22c   :  { %v499_v31 = vpop.permute.xlu1 %498 }
 0x22d   :  { %v511_v34 = vmul.f32 %v499_v31, %v369_v59 }
 0x230   :  { %v504_v32 = vpop.permute.xlu0 %503 }
 0x231   :  { %v516_v33 = vpop.permute.xlu1 %515  ;;  %v512_v38 = vmul.f32 %v504_v32, %v375_v1 }
 0x232   :  { %v526_v35 = vmul.f32 %v516_v33, %v371_v61 }
 0x234   :  { %v529_v36 = vadd.f32 %v526_v35, %v511_v34 }
 0x235   :  { %v520_v37 = vpop.permute.xlu0 %519 }
 0x236   :  { %v527_v39 = vmul.f32 %v520_v37, %v377_v3  ;;  %v534_v40 = vpop.permute.xlu1 %533 }
 0x237   :  { %v544_v41 = vmul.f32 %v534_v40, %v846_v60 }
 0x238   :  { %v530_v0 = vadd.f32 %v527_v39, %v512_v38 }
 0x239   :  { %v547_v42 = vadd.f32 %v544_v41, %v529_v36 }
 0x23a   :  { %v538_v43 = vpop.permute.xlu0 %537 }
 0x23b   :  { %v550_v44 = vmax.f32 %v547_v42, 0.0  ;;  %v545_v18 = vmul.f32 %v538_v43, %v848_v2  ;;  %v509_v45 = vpop.permute.xlu1 %508 }
 0x23c   :  { %v513_v49 = vmul.f32 %v509_v45, %v850_v6 }
 0x23d   :  { %553 = vst [vmem:[#allocation7] sm:$0xff] %v550_v44  ;;  %v548_v46 = vadd.f32 %v545_v18, %v530_v0 }
 0x23f   :  { %v551_v47 = vmax.f32 %v548_v46, 0.0 }
 0x240   :  { %v524_v48 = vpop.permute.xlu1 %523 }
 0x241   :  { %554 = vst [vmem:[#allocation7 + $0x8] sm:$0xff] %v551_v47  ;;  %v528_v50 = vmul.f32 %v524_v48, %v854_v8 }
 0x243   :  { %v531_v51 = vadd.f32 %v528_v50, %v513_v49 }
 0x245   :  { %v542_v52 = vpop.permute.xlu1 %541 }
 0x246   :  { %v546_v53 = vmul.f32 %v542_v52, %v852_v7 }
 0x248   :  { %v549_v54 = vadd.f32 %v546_v53, %v531_v51 }
 0x24a   :  { %v552_v55 = vmax.f32 %v549_v54, 0.0 }
 0x24c   :  { %555 = vst [vmem:[#allocation7 + $0x10] sm:$0xff] %v552_v55 }
 0x24d   :  { %719 = shalt.err (!%p716_p6)
}
 0x24e   :  { %s720_s12 = scalar_lea.hbm %s891_s5, 384 }
 0x24f   :  { %p721_p7 = scmp.ne.s32.totalorder %s891_s5, %s720_s12  ;;  %p724_p8 = scmp.lt.u32.totalorder %s720_s12, %s891_s5 }
 0x251   :  { %p726_p9 = pnand %p724_p8, %p721_p7 }
 0x253   :  { %729 = shalt.err (!%p726_p9)
}
 0x254   :  { %s745_s1 = smov 128   ;;  %s746_s17 = smov 8  }
 0x255   :  { %567 = dma.vmem_to_hbm [thread:$0]  %s562_s8, 384, %s891_s5, [#allocation4], %s745_s1, %s745_s1, %s746_s17  }
 0x256   :  { %734 = dma.done.wait [#allocation4], 384  }
 0x257   :  { %735 = vsyncadd [#allocation4], 4294966912 }
 0x258   :  { %571 = vsyncpa [#allocation3], 1 }
 0x259   :  { %572 = vsyncpa [#allocation6], 1 }
 0x25a   :  { %573 = vsyncpa [#allocation4], 1 }

</bundles_post_ra>
